<compile_context>
chip_gen: v7x
topology: tpu7x:2x2x1
jax: 0.10.0
libtpu: 0.0.40
codegen_flags: <defaults>
</compile_context>

<pallas_src>
import jax
import jax.numpy as jnp
from jax.experimental import pallas as pl
from jax.experimental.pallas import tpu as pltpu


def _round_up(x, m):
    return ((x + m - 1) // m) * m


def _choose_tile_r(R, hidden, dim_f, outdim, requested, vmem_budget_bytes):
    """Largest 32-row-multiple tile that keeps resident weights + double-buffered
    row tiles comfortably inside the scoped-VMEM budget."""
    # resident (single-buffered) weights / biases, bf16 weights + f32 biases
    weights_bytes = (2 * hidden * dim_f) * 2 + dim_f * outdim * 2 + (dim_f + outdim) * 4
    # per-row streamed bytes, x2 for double-buffering: x(bf16) + ox(bf16) + mask(f32)
    # inputs, f32 output, plus a rough f32 hidden-activation scratch allowance.
    per_row = 2 * (2 * hidden * 2 + 4) + 2 * (outdim * 4) + dim_f * 4
    avail = max(vmem_budget_bytes - weights_bytes, 1 << 20)
    cap = max(32, (avail // per_row) // 32 * 32)
    t = min(requested, cap, _round_up(R, 32))
    return max(32, (t // 32) * 32)


def latent_nn_kernel(x_ref, ox_ref, mask_ref, w1a_ref, w1b_ref, b1_ref,
                     w2_ref, b2_ref, out_ref):
    # First Linear, concat-free: [x | ox] @ [W1a ; W1b] == x @ W1a + ox @ W1b
    h = jnp.dot(x_ref[...], w1a_ref[...], preferred_element_type=jnp.float32)
    h = h + jnp.dot(ox_ref[...], w1b_ref[...], preferred_element_type=jnp.float32)
    h = h + b1_ref[...]                  # bias add in f32
    h = jax.nn.sigmoid(h)                # EUP, f32
    # dropout1 / dropout2: identity (eval mode)
    # Second Linear (bf16 MXU path, f32 accumulation)
    y = jnp.dot(h.astype(w2_ref.dtype), w2_ref[...],
                preferred_element_type=jnp.float32)
    y = y + b2_ref[...]
    # mask multiply: (tile_r, 1) broadcast over outdim
    out_ref[...] = (y * mask_ref[...]).astype(out_ref.dtype)


def latent_nn_forward(nodes_embed, original_nodes_embed, mask, w1, b1, w2, b2,
                      *, tile_r=1024, compute_dtype=jnp.bfloat16):
    """
    nodes_embed, original_nodes_embed : (B, n_max, hidden)
    mask                              : (B, n_max, 1)
    w1 : (2*hidden, dim_f), b1 : (1, dim_f)
    w2 : (dim_f, outdim),   b2 : (1, outdim)
    returns (B, n_max, outdim) float32
    """
    B, n_max, hidden = nodes_embed.shape
    dim_f = w1.shape[1]
    outdim = w2.shape[1]
    R = B * n_max

    vmem_limit = 32 * 1024 * 1024
    tile_r = _choose_tile_r(R, hidden, dim_f, outdim, tile_r,
                            vmem_budget_bytes=vmem_limit - (4 << 20))
    R_pad = _round_up(R, tile_r)
    num_tiles = pl.cdiv(R_pad, tile_r)

    # Flatten rows; cast activations to bf16 (halves HBM read traffic, bf16 MXU).
    x = nodes_embed.reshape(R, hidden).astype(compute_dtype)
    ox = original_nodes_embed.reshape(R, hidden).astype(compute_dtype)
    m = mask.reshape(R, 1).astype(jnp.float32)

    # Ragged tail: zero-pad rows; zero mask keeps padded rows benign.
    if R_pad != R:
        pad = R_pad - R
        x = jnp.pad(x, ((0, pad), (0, 0)))
        ox = jnp.pad(ox, ((0, pad), (0, 0)))
        m = jnp.pad(m, ((0, pad), (0, 0)))

    # Split first-layer weight so the kernel never concatenates along lanes.
    w1a = w1[:hidden, :].astype(compute_dtype)
    w1b = w1[hidden:, :].astype(compute_dtype)
    w2c = w2.astype(compute_dtype)
    b1f = b1.reshape(1, dim_f).astype(jnp.float32)
    b2f = b2.reshape(1, outdim).astype(jnp.float32)

    flops = 2 * R_pad * (2 * hidden * dim_f + dim_f * outdim)
    bytes_accessed = (
        x.size * x.dtype.itemsize + ox.size * ox.dtype.itemsize + m.size * 4
        + w1a.size * w1a.dtype.itemsize + w1b.size * w1b.dtype.itemsize
        + w2c.size * w2c.dtype.itemsize + b1f.size * 4 + b2f.size * 4
        + R_pad * outdim * 4)
    cost = pl.CostEstimate(flops=flops,
                           transcendentals=R_pad * dim_f,
                           bytes_accessed=bytes_accessed)

    out = pl.pallas_call(
        latent_nn_kernel,
        out_shape=jax.ShapeDtypeStruct((R_pad, outdim), jnp.float32),
        grid=(num_tiles,),
        in_specs=[
            pl.BlockSpec((tile_r, hidden), lambda i: (i, 0)),   # x tile
            pl.BlockSpec((tile_r, hidden), lambda i: (i, 0)),   # ox tile
            pl.BlockSpec((tile_r, 1), lambda i: (i, 0)),        # mask tile
            pl.BlockSpec((hidden, dim_f), lambda i: (0, 0)),    # W1 top half (resident)
            pl.BlockSpec((hidden, dim_f), lambda i: (0, 0)),    # W1 bottom half (resident)
            pl.BlockSpec((1, dim_f), lambda i: (0, 0)),         # b1 (resident)
            pl.BlockSpec((dim_f, outdim), lambda i: (0, 0)),    # W2 (resident)
            pl.BlockSpec((1, outdim), lambda i: (0, 0)),        # b2 (resident)
        ],
        out_specs=pl.BlockSpec((tile_r, outdim), lambda i: (i, 0)),
        compiler_params=pltpu.CompilerParams(
            dimension_semantics=("parallel",),        # row tiles independent -> megacore on v7x
            vmem_limit_bytes=vmem_limit),             # explicit; fits v5e/v6e/v7x
        cost_estimate=cost,
    )(x, ox, m, w1a, w1b, b1f, w2c, b2f)

    return out[:R].reshape(B, n_max, outdim)


def make_params(key, hidden_dim, dim_f, outdim):
    """Deterministic synthetic params, PyTorch-Linear-like uniform init,
    stored as (in_features, out_features)."""
    k1, k2, k3, k4 = jax.random.split(key, 4)
    in1 = 2 * hidden_dim
    bound1 = 1.0 / (in1 ** 0.5)
    w1 = jax.random.uniform(k1, (in1, dim_f), jnp.float32, -bound1, bound1)
    b1 = jax.random.uniform(k2, (1, dim_f), jnp.float32, -bound1, bound1)
    bound2 = 1.0 / (dim_f ** 0.5)
    w2 = jax.random.uniform(k3, (dim_f, outdim), jnp.float32, -bound2, bound2)
    b2 = jax.random.uniform(k4, (1, outdim), jnp.float32, -bound2, bound2)
    return w1, b1, w2, b2


if __name__ == "__main__":
    # Small shapes consistent with the module's forward signature.
    batch_size, n_max, hidden_dim, dim_f, outdim = 2, 8, 32, 64, 16

    key = jax.random.PRNGKey(0)
    k_in, k_orig, k_mask, k_param = jax.random.split(key, 4)

    nodes_embed = jax.random.normal(k_in, (batch_size, n_max, hidden_dim), jnp.float32)
    original_nodes_embed = jax.random.normal(k_orig, (batch_size, n_max, hidden_dim), jnp.float32)
    # binary node-validity mask, broadcast over output features
    mask = (jax.random.uniform(k_mask, (batch_size, n_max, 1)) > 0.25).astype(jnp.float32)

    w1, b1, w2, b2 = make_params(k_param, hidden_dim, dim_f, outdim)

    out = jax.jit(latent_nn_forward)(nodes_embed, original_nodes_embed, mask, w1, b1, w2, b2)
    jax.block_until_ready(out)
    assert out.shape == (batch_size, n_max, outdim)

    # Reference 1: same math with matched bf16 matmul inputs / f32 accumulation.
    xb = nodes_embed.reshape(-1, hidden_dim).astype(jnp.bfloat16)
    oxb = original_nodes_embed.reshape(-1, hidden_dim).astype(jnp.bfloat16)
    z = (jnp.dot(xb, w1[:hidden_dim].astype(jnp.bfloat16), preferred_element_type=jnp.float32)
         + jnp.dot(oxb, w1[hidden_dim:].astype(jnp.bfloat16), preferred_element_type=jnp.float32)
         + b1)
    h = jax.nn.sigmoid(z)
    y = jnp.dot(h.astype(jnp.bfloat16), w2.astype(jnp.bfloat16),
                preferred_element_type=jnp.float32) + b2
    ref_bf16 = y.reshape(batch_size, n_max, outdim) * mask
    assert jnp.allclose(out, ref_bf16, atol=1e-3, rtol=1e-3), "mismatch vs bf16-matched reference"

    # Reference 2: original full-f32 module math (loose tolerance for bf16 matmuls).
    cat = jnp.concatenate([nodes_embed, original_nodes_embed], axis=2).reshape(-1, 2 * hidden_dim)
    ref_f32 = (jax.nn.sigmoid(cat @ w1 + b1) @ w2 + b2).reshape(batch_size, n_max, outdim) * mask
    assert jnp.allclose(out, ref_f32, atol=3e-2, rtol=3e-2), "mismatch vs f32 reference"

    print("KERNEL_OK")
</pallas_src>

<mosaic_0001>
module attributes {stable_mosaic.version = 11 : i64} {
  func.func @latent_nn_kernel(%arg0: i32, %arg1: memref<32x32xbf16, #tpu.memory_space<vmem>>, %arg2: memref<32x32xbf16, #tpu.memory_space<vmem>>, %arg3: memref<32x1xf32, #tpu.memory_space<vmem>>, %arg4: memref<32x64xbf16, #tpu.memory_space<vmem>>, %arg5: memref<32x64xbf16, #tpu.memory_space<vmem>>, %arg6: memref<1x64xf32, #tpu.memory_space<vmem>>, %arg7: memref<64x16xbf16, #tpu.memory_space<vmem>>, %arg8: memref<1x16xf32, #tpu.memory_space<vmem>>, %arg9: memref<32x16xf32, #tpu.memory_space<vmem>>) attributes {dimension_semantics = [#tpu.dimension_semantics<parallel>], iteration_bounds = array<i64: 1>, scalar_prefetch = 0 : i64, scratch_operands = 0 : i64, tpu.core_type = #tpu.core_type<tc>, window_params = [{transform_indices = @transform_0, window_bounds = array<i64: 32, 32>}, {transform_indices = @transform_1, window_bounds = array<i64: 32, 32>}, {transform_indices = @transform_2, window_bounds = array<i64: 32, 1>}, {pipeline_mode = #tpu.pipeline_mode<synchronous>, transform_indices = @transform_3, window_bounds = array<i64: 32, 64>}, {pipeline_mode = #tpu.pipeline_mode<synchronous>, transform_indices = @transform_4, window_bounds = array<i64: 32, 64>}, {pipeline_mode = #tpu.pipeline_mode<synchronous>, transform_indices = @transform_5, window_bounds = array<i64: 1, 64>}, {pipeline_mode = #tpu.pipeline_mode<synchronous>, transform_indices = @transform_6, window_bounds = array<i64: 64, 16>}, {pipeline_mode = #tpu.pipeline_mode<synchronous>, transform_indices = @transform_7, window_bounds = array<i64: 1, 16>}, {transform_indices = @transform_8, window_bounds = array<i64: 32, 16>}]} {
    %c0 = arith.constant 0 : index
    %c0_0 = arith.constant 0 : index
    %0 = vector.load %arg1[%c0, %c0_0] : memref<32x32xbf16, #tpu.memory_space<vmem>>, vector<32x32xbf16>
    %c0_1 = arith.constant 0 : index
    %c0_2 = arith.constant 0 : index
    %1 = vector.load %arg4[%c0_1, %c0_2] : memref<32x64xbf16, #tpu.memory_space<vmem>>, vector<32x64xbf16>
    %cst = arith.constant dense<0.000000e+00> : vector<32x64xf32>
    %2 = tpu.matmul %0, %1, %cst {dimension_numbers = #tpu.dot_dimension_numbers<[1], [0], [0], [1], [0, 0, 1, 1], [], []>} : vector<32x32xbf16>, vector<32x64xbf16>, vector<32x64xf32> -> vector<32x64xf32>
    %c0_3 = arith.constant 0 : index
    %c0_4 = arith.constant 0 : index
    %3 = vector.load %arg2[%c0_3, %c0_4] : memref<32x32xbf16, #tpu.memory_space<vmem>>, vector<32x32xbf16>
    %c0_5 = arith.constant 0 : index
    %c0_6 = arith.constant 0 : index
    %4 = vector.load %arg5[%c0_5, %c0_6] : memref<32x64xbf16, #tpu.memory_space<vmem>>, vector<32x64xbf16>
    %cst_7 = arith.constant dense<0.000000e+00> : vector<32x64xf32>
    %5 = tpu.matmul %3, %4, %cst_7 {dimension_numbers = #tpu.dot_dimension_numbers<[1], [0], [0], [1], [0, 0, 1, 1], [], []>} : vector<32x32xbf16>, vector<32x64xbf16>, vector<32x64xf32> -> vector<32x64xf32>
    %6 = arith.addf %2, %5 : vector<32x64xf32>
    %c0_8 = arith.constant 0 : index
    %c0_9 = arith.constant 0 : index
    %7 = vector.load %arg6[%c0_8, %c0_9] : memref<1x64xf32, #tpu.memory_space<vmem>>, vector<1x64xf32>
    %8 = vector.broadcast %7 : vector<1x64xf32> to vector<32x64xf32>
    %9 = arith.addf %6, %8 : vector<32x64xf32>
    %10 = arith.negf %9 : vector<32x64xf32>
    %11 = math.exp %10 : vector<32x64xf32>
    %cst_10 = arith.constant 1.000000e+00 : f32
    %12 = vector.broadcast %cst_10 : f32 to vector<32x64xf32>
    %13 = arith.addf %12, %11 : vector<32x64xf32>
    %14 = arith.divf %12, %13 : vector<32x64xf32>
    %15 = arith.truncf %14 : vector<32x64xf32> to vector<32x64xbf16>
    %c0_11 = arith.constant 0 : index
    %c0_12 = arith.constant 0 : index
    %16 = vector.load %arg7[%c0_11, %c0_12] : memref<64x16xbf16, #tpu.memory_space<vmem>>, vector<64x16xbf16>
    %cst_13 = arith.constant dense<0.000000e+00> : vector<32x16xf32>
    %17 = tpu.matmul %15, %16, %cst_13 {dimension_numbers = #tpu.dot_dimension_numbers<[1], [0], [0], [1], [0, 0, 1, 1], [], []>} : vector<32x64xbf16>, vector<64x16xbf16>, vector<32x16xf32> -> vector<32x16xf32>
    %c0_14 = arith.constant 0 : index
    %c0_15 = arith.constant 0 : index
    %18 = vector.load %arg8[%c0_14, %c0_15] : memref<1x16xf32, #tpu.memory_space<vmem>>, vector<1x16xf32>
    %19 = vector.broadcast %18 : vector<1x16xf32> to vector<32x16xf32>
    %20 = arith.addf %17, %19 : vector<32x16xf32>
    %c0_16 = arith.constant 0 : index
    %c0_17 = arith.constant 0 : index
    %21 = vector.load %arg3[%c0_16, %c0_17] : memref<32x1xf32, #tpu.memory_space<vmem>>, vector<32x1xf32>
    %22 = vector.broadcast %21 : vector<32x1xf32> to vector<32x16xf32>
    %23 = arith.mulf %20, %22 : vector<32x16xf32>
    %c0_18 = arith.constant 0 : index
    %c0_19 = arith.constant 0 : index
    %24 = vector.load %arg9[%c0_18, %c0_19] : memref<32x16xf32, #tpu.memory_space<vmem>>, vector<32x16xf32>
    tpu.vector_store %arg9[%c0_18, %c0_19], %23 {strides = array<i32>} : memref<32x16xf32, #tpu.memory_space<vmem>>, vector<32x16xf32>,
    return
  }
  func.func @transform_0(%arg0: i32) -> (i32, i32) {
    %c0_i32 = arith.constant 0 : i32
    %c0_i32_0 = arith.constant 0 : i32
    return %arg0, %c0_i32 : i32, i32
  }
  func.func @transform_1(%arg0: i32) -> (i32, i32) {
    %c0_i32 = arith.constant 0 : i32
    %c0_i32_0 = arith.constant 0 : i32
    return %arg0, %c0_i32 : i32, i32
  }
  func.func @transform_2(%arg0: i32) -> (i32, i32) {
    %c0_i32 = arith.constant 0 : i32
    %c0_i32_0 = arith.constant 0 : i32
    return %arg0, %c0_i32 : i32, i32
  }
  func.func @transform_3(%arg0: i32) -> (i32, i32) {
    %c0_i32 = arith.constant 0 : i32
    %c0_i32_0 = arith.constant 0 : i32
    %c0_i32_1 = arith.constant 0 : i32
    return %c0_i32, %c0_i32_0 : i32, i32
  }
  func.func @transform_4(%arg0: i32) -> (i32, i32) {
    %c0_i32 = arith.constant 0 : i32
    %c0_i32_0 = arith.constant 0 : i32
    %c0_i32_1 = arith.constant 0 : i32
    return %c0_i32, %c0_i32_0 : i32, i32
  }
  func.func @transform_5(%arg0: i32) -> (i32, i32) {
    %c0_i32 = arith.constant 0 : i32
    %c0_i32_0 = arith.constant 0 : i32
    %c0_i32_1 = arith.constant 0 : i32
    return %c0_i32, %c0_i32_0 : i32, i32
  }
  func.func @transform_6(%arg0: i32) -> (i32, i32) {
    %c0_i32 = arith.constant 0 : i32
    %c0_i32_0 = arith.constant 0 : i32
    %c0_i32_1 = arith.constant 0 : i32
    return %c0_i32, %c0_i32_0 : i32, i32
  }
  func.func @transform_7(%arg0: i32) -> (i32, i32) {
    %c0_i32 = arith.constant 0 : i32
    %c0_i32_0 = arith.constant 0 : i32
    %c0_i32_1 = arith.constant 0 : i32
    return %c0_i32, %c0_i32_0 : i32, i32
  }
  func.func @transform_8(%arg0: i32) -> (i32, i32) {
    %c0_i32 = arith.constant 0 : i32
    %c0_i32_0 = arith.constant 0 : i32
    return %arg0, %c0_i32 : i32, i32
  }
}

</mosaic_0001>

<bundles_post_ra>
// kernel: latent_nn_forward.1
= control target key start
LH: loop header
LB: loop body
LE: loop exit
PB: predicated region body
PF: predicated region fallthrough
CT: control target
= control target key end

     0   :  { %vm68_vm0 = vcmask 261120   ;;  %v471_v12 = vmov 0   ;;  %vm277_vm1 = vcmask 523264   ;;  %vm361_vm2 = vcmask 130048   ;;  %s587_s4 = inlined_call_operand.vmem [shape: bf16[32,64], index: 4, kind: input, shape index: {}]   ;;  %s588_s1 = inlined_call_operand.vmem [shape: bf16[32,32], index: 1, kind: input, shape index: {}]   ;;  %s589_s3 = inlined_call_operand.vmem [shape: bf16[32,64], index: 3, kind: input, shape index: {}]   ;;  %s590_s0 = inlined_call_operand.vmem [shape: bf16[32,32], index: 0, kind: input, shape index: {}]   ;;  %s591_s6 = inlined_call_operand.vmem [shape: bf16[64,16], index: 6, kind: input, shape index: {}]   ;;  %s592_s2 = inlined_call_operand.vmem [shape: f32[32,1], index: 2, kind: input, shape index: {}]   ;;  %s593_s5 = inlined_call_operand.vmem [shape: f32[1,64], index: 5, kind: input, shape index: {}]   ;;  %s594_s7 = inlined_call_operand.vmem [shape: f32[1,16], index: 7, kind: input, shape index: {}]   ;;  %s595_s8 = inlined_call_operand.vmem [shape: f32[32,16], index: 8, kind: output, shape index: {}]  }
   0x1   :  { %v443_v0 = vld [vmem:[%s587_s4] sm:$0xff]   ;;  %v444_v1 = vld [vmem:[%s587_s4 + $0x8] sm:$0xff]   ;;  %v453_v10 = vld [vmem:[%s591_s6 + $0x10] sm:$0xff]   ;;  %442 = vset.pattern.permute.xlu1 %v471_v12  ;;  %441 = vset.pattern.permute.xlu0 %v471_v12 }
   0x2   :  { %408 = vmatprep.subr.bf16.mxu0 %v443_v0  ;;  %v445_v2 = vld [vmem:[%s588_s1] sm:$0xff]   ;;  %v446_v4 = vld [vmem:[%s588_s1 + $0x8] sm:$0xff]   ;;  %v454_v11 = vld [vmem:[%s591_s6 + $0x18] sm:$0xff]  }
   0x3   :  { %409 = vmatpush3.bf16.msra.mxu0 %v443_v0  ;;  %412 = vmatprep.mubr.msk.bf16.mxu0 %vm68_vm0, %v445_v2  ;;  %v447_v3 = vld [vmem:[%s589_s3] sm:$0xff]   ;;  %v448_v6 = vld [vmem:[%s589_s3 + $0x8] sm:$0xff]   ;;  %v335_v13 = vld [vmem:[%s592_s2 + $0x10] sm:$0xff] }
   0x4   :  { %410 = vmatprep.subr.bf16.mxu0 %v444_v1  ;;  %v449_v5 = vld [vmem:[%s590_s0] sm:$0xff]   ;;  %v450_v7 = vld [vmem:[%s590_s0 + $0x8] sm:$0xff]   ;;  %349 = vperm.xlu1 %442, %v335_v13   ;;  %v336_v15 = vld [vmem:[%s592_s2 + $0x18] sm:$0xff] }
   0x5   :  { %v451_v8 = vld [vmem:[%s591_s6] sm:$0xff]   ;;  %v452_v9 = vld [vmem:[%s591_s6 + $0x8] sm:$0xff]  }
   0x6   :  { %424 = vmatprep.subr.bf16.mxu1 %v451_v8  ;;  %v333_v14 = vld [vmem:[%s592_s2] sm:$0xff]  ;;  %v334_v16 = vld [vmem:[%s592_s2 + $0x8] sm:$0xff] }
   0x7   :  { %411 = vmatpush3.bf16.msra.mxu0 %v444_v1  ;;  %425 = vmatpush3.bf16.msra.mxu1 %v451_v8  ;;  %v382_v17 = vld [vmem:[%s593_s5] ss:$0 sm:$0xff] }
   0x8   :  { %416 = vmatprep.subr.bf16.mxu0 %v447_v3  ;;  %426 = vmatprep.subr.bf16.mxu1 %v452_v9  ;;  %v387_v45 = vld [vmem:[%s594_s7] ss:$0 sm:$0xff] }
   0x9   :  { %339 = vperm.xlu0 %441, %v333_v14   ;;  %354 = vperm.xlu1 %442, %v336_v15  }
   0xa   :  { %413 = vmatmul.mubr.msk.bf16.vlgmr.msra.gmra.mrb[0].mxu0 %vm68_vm0, %v446_v4 }
   0xb   :  { %417 = vmatpush3.bf16.msra.mxu0 %v447_v3  ;;  %420 = vmatprep.mubr.msk.bf16.mxu0 %vm68_vm0, %v449_v5 }
   0xc   :  { %418 = vmatprep.subr.bf16.mxu0 %v448_v6  ;;  %427 = vmatpush3.bf16.msra.mxu1 %v452_v9 }
   0xd   :  { %428 = vmatprep.subr.bf16.mxu1 %v453_v10  ;;  %344 = vperm.xlu0 %441, %v334_v16  }
   0xf   :  { %419 = vmatpush3.bf16.msra.mxu0 %v448_v6 }
  0x10   :  { %429 = vmatpush3.bf16.msra.mxu1 %v453_v10 }
  0x11   :  { %430 = vmatprep.subr.bf16.mxu1 %v454_v11 }
  0x14   :  { %431 = vmatpush3.bf16.msra.mxu1 %v454_v11 }
  0x16   :  { %421 = vmatmul.mubr.msk.bf16.vlgmr.msra.gmra.mrb[0].mxu0 %vm68_vm0, %v450_v7 }
  0x83   :  { %v350_v44 = vpop.permute.xlu1 %349 }
  0x88   :  { %v340_v46 = vpop.permute.xlu0 %339  ;;  %v355_v56 = vpop.permute.xlu1 %354 }
  0x8c   :  { %v345_v58 = vpop.permute.xlu0 %344 }
  0xe9   :  { %v422_v18 = vpop.f32.mrb[0].mxu0 }
  0xea   :  { %v210_v19 = vadd.f32 %v422_v18, %v382_v17  ;;  %v186_v20 = vpop.f32.mrb[1].mxu0 }
  0xeb   :  { %v208_v21 = vadd.f32 %v382_v17, %v186_v20  ;;  %v423_v22 = vpop.f32.mrb[2].mxu0 }
  0xec   :  { %v385_v23 = vmul.f32 -1.442695, %v210_v19  ;;  %v211_v24 = vadd.f32 %v423_v22, %v382_v17  ;;  %v189_v25 = vpop.f32.mrb[3].mxu0 }
  0xed   :  { %v383_v26 = vmul.f32 -1.442695, %v208_v21  ;;  %v209_v27 = vadd.f32 %v382_v17, %v189_v25 }
  0xee   :  { %455 = vpow2.f32 %v385_v23  ;;  %v386_v28 = vmul.f32 -1.442695, %v211_v24 }
  0xef   :  { %457 = vpow2.f32 %v383_v26  ;;  %v384_v29 = vmul.f32 -1.442695, %v209_v27 }
  0xf0   :  { %459 = vpow2.f32 %v386_v28 }
  0xf1   :  { %461 = vpow2.f32 %v384_v29 }
  0xf8   :  { %v456_v30 = vpop.eup %455 }
  0xf9   :  { %v458_v31 = vpop.eup %457  ;;  %v226_v32 = vadd.f32 1.0, %v456_v30 }
  0xfa   :  { %v460_v33 = vpop.eup %459  ;;  %v224_v34 = vadd.f32 1.0, %v458_v31 }
  0xfb   :  { %v462_v35 = vpop.eup %461  ;;  %463 = vrcp.f32 %v226_v32  ;;  %v227_v36 = vadd.f32 1.0, %v460_v33 }
  0xfc   :  { %465 = vrcp.f32 %v224_v34  ;;  %v225_v37 = vadd.f32 1.0, %v462_v35 }
  0xfd   :  { %467 = vrcp.f32 %v227_v36 }
  0xfe   :  { %469 = vrcp.f32 %v225_v37 }
 0x105   :  { %v464_v38 = vpop.eup %463 }
 0x106   :  { %v466_v39 = vpop.eup %465 }
 0x107   :  { %v468_v40 = vpop.eup %467 }
 0x108   :  { %v470_v41 = vpop.eup %469  ;;  %v237_v42 = vpack.c.bf16 %v468_v40, %v464_v38 }
 0x109   :  { %v236_v43 = vpack.c.bf16 %v470_v41, %v466_v39 }
 0x10b   :  { %432 = vmatprep.mubr.msk.bf16.mxu1 %vm277_vm1, %v236_v43 }
 0x10c   :  { %433 = vmatmul.mubr.msk.bf16.vlgmr.msra.gmra.mrb[0].mxu1 %vm277_vm1, %v237_v42 }
 0x1df   :  { %v434_v47 = vpop.f32.mrb[0].mxu1 }
 0x1e0   :  { %v327_v48 = vadd.f32 %v434_v47, %v387_v45  ;;  %v318_v49 = vpop.f32.mrb[1].mxu1 }
 0x1e1   :  { %v319_v50 = vadd.f32 %v387_v45, %v318_v49  ;;  %v435_v51 = vpop.f32.mrb[2].mxu1 }
 0x1e2   :  { %v359_v52 = vmul.f32 %v350_v44, %v327_v48  ;;  %v330_v53 = vadd.f32 %v435_v51, %v387_v45  ;;  %v321_v54 = vpop.f32.mrb[3].mxu1 }
 0x1e3   :  { %v357_v55 = vmul.f32 %v340_v46, %v319_v50  ;;  %v322_v57 = vadd.f32 %v387_v45, %v321_v54 }
 0x1e4   :  { %364 = vst.msk [vmem:[%s595_s8 + $0x10] sm:$0xff] %vm361_vm2, %v359_v52  ;;  %v360_v59 = vmul.f32 %v355_v56, %v330_v53 }
 0x1e5   :  { %362 = vst.msk [vmem:[%s595_s8] sm:$0xff] %vm361_vm2, %v357_v55  ;;  %v358_v60 = vmul.f32 %v345_v58, %v322_v57 }
 0x1e6   :  { %365 = vst.msk [vmem:[%s595_s8 + $0x18] sm:$0xff] %vm361_vm2, %v360_v59 }
 0x1e7   :  { %363 = vst.msk [vmem:[%s595_s8 + $0x8] sm:$0xff] %vm361_vm2, %v358_v60 }

</bundles_post_ra>
